<compile_context>
chip_gen: v7x
topology: tpu7x:2x2x1
jax: 0.10.0
libtpu: 0.0.40
codegen_flags: <defaults>
</compile_context>

<pallas_src>
import jax
import jax.numpy as jnp
from jax.experimental import pallas as pl
from jax.experimental.pallas import tpu as pltpu


def _round_up(x: int, m: int) -> int:
    return (x + m - 1) // m * m


# ----------------------------------------------------------------------------
# Pallas kernel: out = relu(x @ W1 + b1) @ W2 + b2
#   x:  (TM, K)   bf16     W1: (K, Hp)  bf16   b1: (1, Hp) f32
#   W2: (Hp, N)   bf16     b2: (1, N)   f32    out: (TM, N) f32
# Both matmuls run bf16 x bf16 -> f32 on the MXU; bias/ReLU in f32 on the VPU.
# ----------------------------------------------------------------------------
def _mlp_kernel(x_ref, w1_ref, b1_ref, w2_ref, b2_ref, o_ref):
    h = jnp.dot(x_ref[...], w1_ref[...], preferred_element_type=jnp.float32)
    h = jnp.maximum(h + b1_ref[...], 0.0)                     # bias + ReLU (f32)
    o = jnp.dot(h.astype(jnp.bfloat16), w2_ref[...],
                preferred_element_type=jnp.float32)
    o_ref[...] = (o + b2_ref[...]).astype(o_ref.dtype)


# ----------------------------------------------------------------------------
# One-time parameter prep (hoisted out of the per-call path).
# Only the hidden dim is lane-padded (exact: padded hidden units are
# relu(0 + 0) = 0 and meet zero rows of W2).  K and num_classes stay unpadded.
# ----------------------------------------------------------------------------
def prep_params(w1, b1, w2, b2):
    hidden = w1.shape[1]
    hp = _round_up(hidden, 128)
    w1b = jnp.pad(w1.astype(jnp.bfloat16), ((0, 0), (0, hp - hidden)))
    b1f = jnp.pad(b1.astype(jnp.float32), ((0, 0), (0, hp - hidden)))
    w2b = jnp.pad(w2.astype(jnp.bfloat16), ((0, hp - hidden), (0, 0)))
    b2f = b2.astype(jnp.float32)
    return w1b, b1f, w2b, b2f


def _choose_batch_tiling(batch: int, tm_cap: int):
    """Pick (tile_m, padded_batch).  tile_m is a multiple of 16 (bf16 packing);
    for large batches ensure >= 2 grid steps so the 'parallel' axis can shard
    over v7x's two TensorCores."""
    bp16 = _round_up(batch, 16)
    tile_m = min(tm_cap, bp16)
    if bp16 > 16 and tile_m >= bp16:
        tile_m = _round_up(bp16 // 2, 16)
    bp = _round_up(batch, tile_m)
    return tile_m, bp


def passthrough_net_forward(x, w1b, b1f, w2b, b2f, *, tm=1024):
    """PassthroughNet MLP body; params must already be prepped (prep_params)."""
    batch, k = x.shape
    hp = w1b.shape[1]
    nc = w2b.shape[1]

    tile_m, bp = _choose_batch_tiling(batch, tm)

    xb = x.astype(jnp.bfloat16)
    if bp != batch:
        xb = jnp.pad(xb, ((0, bp - batch), (0, 0)))

    grid = (bp // tile_m,)

    cost = pl.CostEstimate(
        flops=2 * bp * k * hp + 2 * bp * hp * nc,
        transcendentals=0,
        bytes_accessed=(bp * k * 2          # x (bf16)
                        + k * hp * 2        # w1 (bf16)
                        + hp * 4            # b1 (f32)
                        + hp * nc * 2       # w2 (bf16)
                        + nc * 4            # b2 (f32)
                        + bp * nc * 4),     # out (f32)
    )

    out = pl.pallas_call(
        _mlp_kernel,
        out_shape=jax.ShapeDtypeStruct((bp, nc), jnp.float32),
        grid=grid,
        in_specs=[
            pl.BlockSpec((tile_m, k), lambda i: (i, 0)),  # x: streamed per batch tile (K unpadded)
            pl.BlockSpec((k, hp), lambda i: (0, 0)),      # w1: VMEM-resident across grid
            pl.BlockSpec((1, hp), lambda i: (0, 0)),      # b1: resident
            pl.BlockSpec((hp, nc), lambda i: (0, 0)),     # w2: resident (N unpadded)
            pl.BlockSpec((1, nc), lambda i: (0, 0)),      # b2: resident
        ],
        out_specs=pl.BlockSpec((tile_m, nc), lambda i: (i, 0)),
        compiler_params=pltpu.CompilerParams(
            dimension_semantics=("parallel",)),           # batch tiles shard over v7x's 2 TCs
        cost_estimate=cost,
    )(xb, w1b, b1f, w2b, b2f)

    # Padded batch rows compute relu(b1) @ w2 + b2 (non-zero); this slice must
    # always be applied.  It fuses with the downstream reshape under jit.
    return out[:batch]


# Pure function for the wrapped original module (PassthroughNet), jitted so the
# x cast/pad, pallas_call, batch slice and view/reshape live in one executable.
def _original_module_fn(input1, passthrough_input, w1b, b1f, w2b, b2f):
    out1 = passthrough_net_forward(input1, w1b, b1f, w2b, b2f)
    # out1 = out1.view(passthrough_input.size()[0], -1)
    out1 = out1.reshape(passthrough_input.shape[0], -1)
    return out1, passthrough_input


_original_module_jit = jax.jit(_original_module_fn)


# ----------------------------------------------------------------------------
# _OutputIdentityOp equivalent: an identity whose gradient is the identity.
# In JAX this is literally the identity function (kept explicit for parity).
# ----------------------------------------------------------------------------
def _output_identity_op(x):
    return x


# ----------------------------------------------------------------------------
# _FlattenedModule equivalent
# ----------------------------------------------------------------------------
class FlattenedModule:
    """JAX port of _FlattenedModule wrapping the docstring's PassthroughNet.

    forward(*flat_args):
      - unflatten flat args into (args, kwargs) using the stored schema
      - run the original module (jitted Pallas MLP + passthrough)
      - flatten the outputs (extract schema) and apply an Identity to each
    """

    def __init__(self, params, num_positionals=2):
        # One-time weight/bias pad + bf16 cast (hoisted out of the hot path).
        self._prepped_params = prep_params(*params)
        self._num_positionals = num_positionals
        self._args_schema = ("input1", "passthrough_input")  # trivial flat schema
        self._kwargs_schema = {}
        self._output_schema = None

    # --- original module (PassthroughNet) -----------------------------------
    def _original_module(self, input1, passthrough_input):
        batch = input1.shape[0]
        num_classes = self._prepped_params[2].shape[1]
        assert (batch * num_classes) % passthrough_input.shape[0] == 0, (
            "view: batch*num_classes must be divisible by passthrough leading dim")
        return _original_module_jit(input1, passthrough_input,
                                    *self._prepped_params)

    # --- _FlattenedModule.forward --------------------------------------------
    def forward(self, *args):
        # unflatten_data_using_schema: schema here is a flat tuple of
        # positionals and an empty kwargs dict.
        # TODO(synk): general nested-schema unflatten/flatten (dicts/lists of
        # tensors) is plain Python bookkeeping with no Pallas equivalent.
        new_args = args[: self._num_positionals]
        new_kwargs = {}
        original_outputs = self._original_module(*new_args, **new_kwargs)

        # _extract_schema: flatten outputs (already a flat tuple of tensors)
        flatten_outputs = list(original_outputs)
        self._output_schema = tuple(
            (tuple(o.shape), str(o.dtype)) for o in flatten_outputs
        )

        # prepend Identity to every output (parity with _OutputIdentityOp)
        return [_output_identity_op(o) for o in flatten_outputs]


# ----------------------------------------------------------------------------
# Deterministic parameter init + driver
# ----------------------------------------------------------------------------
def init_params(key, input_size, hidden_size, num_classes):
    k1, k2, k3, k4 = jax.random.split(key, 4)
    scale1 = 1.0 / jnp.sqrt(input_size)
    scale2 = 1.0 / jnp.sqrt(hidden_size)
    w1 = jax.random.uniform(k1, (input_size, hidden_size), jnp.float32,
                            -scale1, scale1)
    b1 = jax.random.uniform(k2, (1, hidden_size), jnp.float32, -scale1, scale1)
    w2 = jax.random.uniform(k3, (hidden_size, num_classes), jnp.float32,
                            -scale2, scale2)
    b2 = jax.random.uniform(k4, (1, num_classes), jnp.float32, -scale2, scale2)
    return w1, b1, w2, b2


if __name__ == "__main__":
    key = jax.random.PRNGKey(0)
    k_x, k_pt, k_p = jax.random.split(key, 3)

    batch, input_size, hidden_size, num_classes = 8, 32, 128, 16

    # Flattened positional inputs (schema: two positionals, no kwargs).
    input1 = jax.random.normal(k_x, (batch, input_size), jnp.float32)
    # Only passthrough_input.shape[0] matters for the view; 8*16 = 4*32.
    passthrough_input = jax.random.normal(k_pt, (4, 5), jnp.float32)

    params = init_params(k_p, input_size, hidden_size, num_classes)
    module = FlattenedModule(params, num_positionals=2)

    outputs = module.forward(input1, passthrough_input)
    outputs = [jax.block_until_ready(o) for o in outputs]

    # Reference check against plain-JAX f32 math (bf16 MXU inputs -> loosen tol).
    w1, b1, w2, b2 = params
    ref = jnp.maximum(input1 @ w1 + b1, 0.0) @ w2 + b2
    ref = ref.reshape(passthrough_input.shape[0], -1)
    assert outputs[0].shape == (4, 32)
    assert jnp.allclose(outputs[0], ref, atol=2e-2, rtol=2e-2)
    assert jnp.array_equal(outputs[1], passthrough_input)

    print("KERNEL_OK")
</pallas_src>

<mosaic_0001>
module attributes {stable_mosaic.version = 11 : i64} {
  func.func @_mlp_kernel(%arg0: i32, %arg1: memref<16x32xbf16, #tpu.memory_space<vmem>>, %arg2: memref<32x128xbf16, #tpu.memory_space<vmem>>, %arg3: memref<1x128xf32, #tpu.memory_space<vmem>>, %arg4: memref<128x16xbf16, #tpu.memory_space<vmem>>, %arg5: memref<1x16xf32, #tpu.memory_space<vmem>>, %arg6: memref<16x16xf32, #tpu.memory_space<vmem>>) attributes {dimension_semantics = [#tpu.dimension_semantics<parallel>], iteration_bounds = array<i64: 1>, scalar_prefetch = 0 : i64, scratch_operands = 0 : i64, tpu.core_type = #tpu.core_type<tc>, window_params = [{transform_indices = @transform_0, window_bounds = array<i64: 16, 32>}, {pipeline_mode = #tpu.pipeline_mode<synchronous>, transform_indices = @transform_1, window_bounds = array<i64: 32, 128>}, {pipeline_mode = #tpu.pipeline_mode<synchronous>, transform_indices = @transform_2, window_bounds = array<i64: 1, 128>}, {pipeline_mode = #tpu.pipeline_mode<synchronous>, transform_indices = @transform_3, window_bounds = array<i64: 128, 16>}, {pipeline_mode = #tpu.pipeline_mode<synchronous>, transform_indices = @transform_4, window_bounds = array<i64: 1, 16>}, {transform_indices = @transform_5, window_bounds = array<i64: 16, 16>}]} {
    %c0 = arith.constant 0 : index
    %c0_0 = arith.constant 0 : index
    %0 = vector.load %arg1[%c0, %c0_0] : memref<16x32xbf16, #tpu.memory_space<vmem>>, vector<16x32xbf16>
    %c0_1 = arith.constant 0 : index
    %c0_2 = arith.constant 0 : index
    %1 = vector.load %arg2[%c0_1, %c0_2] : memref<32x128xbf16, #tpu.memory_space<vmem>>, vector<32x128xbf16>
    %cst = arith.constant dense<0.000000e+00> : vector<16x128xf32>
    %2 = tpu.matmul %0, %1, %cst {dimension_numbers = #tpu.dot_dimension_numbers<[1], [0], [0], [1], [0, 0, 1, 1], [], []>} : vector<16x32xbf16>, vector<32x128xbf16>, vector<16x128xf32> -> vector<16x128xf32>
    %c0_3 = arith.constant 0 : index
    %c0_4 = arith.constant 0 : index
    %3 = vector.load %arg3[%c0_3, %c0_4] : memref<1x128xf32, #tpu.memory_space<vmem>>, vector<1x128xf32>
    %4 = vector.broadcast %3 : vector<1x128xf32> to vector<16x128xf32>
    %5 = arith.addf %2, %4 : vector<16x128xf32>
    %cst_5 = arith.constant 0.000000e+00 : f32
    %6 = vector.broadcast %cst_5 : f32 to vector<16x128xf32>
    %7 = arith.maximumf %5, %6 : vector<16x128xf32>
    %8 = arith.truncf %7 : vector<16x128xf32> to vector<16x128xbf16>
    %c0_6 = arith.constant 0 : index
    %c0_7 = arith.constant 0 : index
    %9 = vector.load %arg4[%c0_6, %c0_7] : memref<128x16xbf16, #tpu.memory_space<vmem>>, vector<128x16xbf16>
    %cst_8 = arith.constant dense<0.000000e+00> : vector<16x16xf32>
    %10 = tpu.matmul %8, %9, %cst_8 {dimension_numbers = #tpu.dot_dimension_numbers<[1], [0], [0], [1], [0, 0, 1, 1], [], []>} : vector<16x128xbf16>, vector<128x16xbf16>, vector<16x16xf32> -> vector<16x16xf32>
    %c0_9 = arith.constant 0 : index
    %c0_10 = arith.constant 0 : index
    %11 = vector.load %arg5[%c0_9, %c0_10] : memref<1x16xf32, #tpu.memory_space<vmem>>, vector<1x16xf32>
    %12 = vector.broadcast %11 : vector<1x16xf32> to vector<16x16xf32>
    %13 = arith.addf %10, %12 : vector<16x16xf32>
    %c0_11 = arith.constant 0 : index
    %c0_12 = arith.constant 0 : index
    %14 = vector.load %arg6[%c0_11, %c0_12] : memref<16x16xf32, #tpu.memory_space<vmem>>, vector<16x16xf32>
    tpu.vector_store %arg6[%c0_11, %c0_12], %13 {strides = array<i32>} : memref<16x16xf32, #tpu.memory_space<vmem>>, vector<16x16xf32>,
    return
  }
  func.func @transform_0(%arg0: i32) -> (i32, i32) {
    %c0_i32 = arith.constant 0 : i32
    %c0_i32_0 = arith.constant 0 : i32
    return %arg0, %c0_i32 : i32, i32
  }
  func.func @transform_1(%arg0: i32) -> (i32, i32) {
    %c0_i32 = arith.constant 0 : i32
    %c0_i32_0 = arith.constant 0 : i32
    %c0_i32_1 = arith.constant 0 : i32
    return %c0_i32, %c0_i32_0 : i32, i32
  }
  func.func @transform_2(%arg0: i32) -> (i32, i32) {
    %c0_i32 = arith.constant 0 : i32
    %c0_i32_0 = arith.constant 0 : i32
    %c0_i32_1 = arith.constant 0 : i32
    return %c0_i32, %c0_i32_0 : i32, i32
  }
  func.func @transform_3(%arg0: i32) -> (i32, i32) {
    %c0_i32 = arith.constant 0 : i32
    %c0_i32_0 = arith.constant 0 : i32
    %c0_i32_1 = arith.constant 0 : i32
    return %c0_i32, %c0_i32_0 : i32, i32
  }
  func.func @transform_4(%arg0: i32) -> (i32, i32) {
    %c0_i32 = arith.constant 0 : i32
    %c0_i32_0 = arith.constant 0 : i32
    %c0_i32_1 = arith.constant 0 : i32
    return %c0_i32, %c0_i32_0 : i32, i32
  }
  func.func @transform_5(%arg0: i32) -> (i32, i32) {
    %c0_i32 = arith.constant 0 : i32
    %c0_i32_0 = arith.constant 0 : i32
    return %arg0, %c0_i32 : i32, i32
  }
}

</mosaic_0001>

<bundles_post_ra>
// kernel: _original_module_fn.1
= control target key start
LH: loop header
LB: loop body
LE: loop exit
PB: predicated region body
PF: predicated region fallthrough
CT: control target
= control target key end

     0   :  { %v285_v0 = vmov 0.0   ;;  %vm286_vm0 = vmmov 0   ;;  %vm51_vm1 = vcmask 261120   ;;  %vm211_vm2 = vcmask 130048   ;;  %s362_s1 = inlined_call_operand.vmem [shape: bf16[32,128], index: 1, kind: input, shape index: {}]   ;;  %s363_s3 = inlined_call_operand.vmem [shape: bf16[128,16], index: 3, kind: input, shape index: {}]   ;;  %s364_s0 = inlined_call_operand.vmem [shape: bf16[16,32], index: 0, kind: input, shape index: {}]   ;;  %s365_s2 = inlined_call_operand.vmem [shape: f32[1,128], index: 2, kind: input, shape index: {}]   ;;  %s366_s4 = inlined_call_operand.vmem [shape: f32[1,16], index: 4, kind: input, shape index: {}]   ;;  %s367_s5 = inlined_call_operand.vmem [shape: f32[16,16], index: 5, kind: output, shape index: {}]  }
   0x1   :  { %244 = vmatprep.subr.bf16.mxu0 %v285_v0  ;;  %v274_v1 = vld [vmem:[%s362_s1] sm:$0xff]   ;;  %248 = vmatprep.mubr.msk.bf16.mxu0 %vm286_vm0, %v285_v0  ;;  %v275_v2 = vld [vmem:[%s362_s1 + $0x8] sm:$0xff]   ;;  %v279_v6 = vld [vmem:[%s363_s3 + $0x10] sm:$0xff]  }
   0x2   :  { %252 = vmatprep.subr.bf16.mxu1 %v285_v0  ;;  %268 = vmatprep.mubr.msk.bf16.mxu1 %vm286_vm0, %v285_v0  ;;  %v277_v3 = vld [vmem:[%s363_s3] sm:$0xff]   ;;  %v278_v5 = vld [vmem:[%s363_s3 + $0x8] sm:$0xff]   ;;  %v280_v7 = vld [vmem:[%s363_s3 + $0x18] sm:$0xff]  }
   0x3   :  { %245 = vmatpush3.bf16.msra.mxu0 %v274_v1  ;;  %v276_v4 = vld [vmem:[%s364_s0] sm:$0xff]   ;;  %253 = vmatpush3.bf16.msra.mxu1 %v277_v3  ;;  %v282_v9 = vld [vmem:[%s363_s3 + $0x28] sm:$0xff]   ;;  %v283_v10 = vld [vmem:[%s363_s3 + $0x30] sm:$0xff]  }
   0x4   :  { %246 = vmatprep.subr.bf16.mxu0 %v285_v0  ;;  %254 = vmatprep.subr.bf16.mxu1 %v285_v0  ;;  %v281_v8 = vld [vmem:[%s363_s3 + $0x20] sm:$0xff]   ;;  %v284_v11 = vld [vmem:[%s363_s3 + $0x38] sm:$0xff]  }
   0x5   :  { %v218_v12 = vld [vmem:[%s365_s2] ss:$0 sm:$0xff] }
   0x6   :  { %v223_v22 = vld [vmem:[%s366_s4] ss:$0 sm:$0xff] }
   0x7   :  { %247 = vmatpush3.bf16.msra.mxu0 %v275_v2  ;;  %255 = vmatpush3.bf16.msra.mxu1 %v278_v5 }
   0x8   :  { %256 = vmatprep.subr.bf16.mxu1 %v285_v0 }
   0xa   :  { %249 = vmatmul.mubr.msk.bf16.vlgmr.msra.gmra.mrb[0].mxu0 %vm51_vm1, %v276_v4 }
   0xb   :  { %257 = vmatpush3.bf16.msra.mxu1 %v279_v6 }
   0xc   :  { %258 = vmatprep.subr.bf16.mxu1 %v285_v0 }
   0xf   :  { %259 = vmatpush3.bf16.msra.mxu1 %v280_v7 }
  0x10   :  { %260 = vmatprep.subr.bf16.mxu1 %v285_v0 }
  0x13   :  { %261 = vmatpush3.bf16.msra.mxu1 %v281_v8 }
  0x14   :  { %262 = vmatprep.subr.bf16.mxu1 %v285_v0 }
  0x17   :  { %263 = vmatpush3.bf16.msra.mxu1 %v282_v9 }
  0x18   :  { %264 = vmatprep.subr.bf16.mxu1 %v285_v0 }
  0x1b   :  { %265 = vmatpush3.bf16.msra.mxu1 %v283_v10 }
  0x1c   :  { %266 = vmatprep.subr.bf16.mxu1 %v285_v0 }
  0x1f   :  { %267 = vmatpush3.bf16.msra.mxu1 %v284_v11 }
  0xdd   :  { %v89_v13 = vpop.f32.mrb[0].mxu0 }
  0xde   :  { %v90_v14 = vadd.f32 %v218_v12, %v89_v13  ;;  %v250_v15 = vpop.f32.mrb[1].mxu0 }
  0xdf   :  { %v92_v16 = vpop.f32.mrb[2].mxu0 }
  0xe0   :  { %v93_v17 = vadd.f32 %v218_v12, %v92_v16  ;;  %v251_v18 = vpop.f32.mrb[3].mxu0  ;;  %v96_v19 = vmax.f32 %v90_v14, 0.0 }
  0xe2   :  { %v97_v20 = vmax.f32 %v93_v17, 0.0 }
  0xe4   :  { %v98_v21 = vpack.c.bf16 %v97_v20, %v96_v19 }
  0xe6   :  { %269 = vmatmul.mubr.bf16.vlgmr.msra.gmra.mrb[0].mxu1 %v98_v21 }
 0x1b9   :  { %v204_v23 = vpop.f32.mrb[0].mxu1 }
 0x1ba   :  { %v205_v24 = vadd.f32 %v223_v22, %v204_v23  ;;  %v270_v25 = vpop.f32.mrb[1].mxu1 }
 0x1bb   :  { %v207_v26 = vpop.f32.mrb[2].mxu1 }
 0x1bc   :  { %212 = vst.msk [vmem:[%s367_s5] sm:$0xff] %vm211_vm2, %v205_v24  ;;  %v208_v27 = vadd.f32 %v223_v22, %v207_v26  ;;  %v271_v28 = vpop.f32.mrb[3].mxu1 }
 0x1be   :  { %213 = vst.msk [vmem:[%s367_s5 + $0x8] sm:$0xff] %vm211_vm2, %v208_v27 }

</bundles_post_ra>
